<compile_context>
chip_gen: v6e
topology: v6e:2x2x1
jax: 0.10.0
libtpu: 0.0.40
codegen_flags: <defaults>
</compile_context>

<pallas_src>
import functools

import jax
import jax.numpy as jnp
from jax.experimental import pallas as pl
from jax.experimental.pallas import tpu as pltpu


def fused_cnn_kernel(tok_ref, emb_ref, w_ref, bcat_ref, lw_ref, lb_ref, o_ref, *,
                     kh_sorted, TB, L, C, n_class, leak):
    """Embedding gather + conv heads + time max-pool + bias + LeakyReLU + linear (one block).

    tok_ref : (TM, 1)          int32  token ids of TB whole sequences (TM = TB*L)
    emb_ref : (V_pad, E)       bf16   embedding table (vocab rows padded to a sublane multiple)
    w_ref   : (E, sum(kh)*C)   bf16   conv taps, columns grouped by tap offset, then by head
    bcat_ref: (1, H*C)         f32    per-head conv biases (sorted-head order)
    lw_ref  : (n_class, H*C)   f32    linear weight (columns permuted to sorted-head order)
    lb_ref  : (1, n_class)     f32    linear bias
    o_ref   : (TB, n_class)    f32
    """
    TM = TB * L
    H = len(kh_sorted)
    max_kh = kh_sorted[-1]
    V = emb_ref.shape[0]

    # ---- Embedding gather as an exact one-hot MXU matmul (tiny vocab table is VMEM-resident). --
    # TODO(synk): a large production vocab would need a DMA-gather path instead of one-hot.
    tok = tok_ref[...]                                                    # (TM, 1) int32
    eq = jax.lax.broadcasted_iota(jnp.int32, (TM, V), 1) == tok           # (TM, V) bool
    onehot = jnp.where(eq, 1.0, 0.0).astype(jnp.bfloat16)
    x = jnp.dot(onehot, emb_ref[...], preferred_element_type=jnp.float32)  # (TM, E) f32

    # ---- Conv heads: one matmul per tap offset on the rolled (narrow) X, f32 accumulation. ----
    acc = [None] * H
    off = 0
    for i in range(max_kh):
        # Heads (sorted ascending by kh) that have a tap at offset i form a suffix.
        h_start = next(h for h in range(H) if kh_sorted[h] > i)
        n_i = H - h_start
        xi = x if i == 0 else pltpu.roll(x, shift=TM - i, axis=0)         # row t <- row t+i
        y = jnp.dot(xi.astype(jnp.bfloat16), w_ref[:, off:off + n_i * C],
                    preferred_element_type=jnp.float32)                   # (TM, n_i*C) f32
        for j in range(n_i):
            part = y[:, j * C:(j + 1) * C]                                # 128-lane aligned slice
            h = h_start + j
            acc[h] = part if acc[h] is None else acc[h] + part
        off += n_i * C

    # ---- Batch-vectorized time max-pool: one mask + one max per head (no per-row loops). ----
    t_idx = jax.lax.broadcasted_iota(jnp.int32, (L, C), 0)                # time index per row
    pooled = []
    for h in range(H):
        kh = kh_sorted[h]
        a3 = acc[h].reshape(TB, L, C)                                     # free split: L % 8 == 0
        a3 = jnp.where(t_idx[None, :, :] < (L - kh + 1), a3, -jnp.inf)    # mask rows t >= L-kh+1
        pooled.append(jnp.max(a3, axis=1))                                # (TB, C)
    feats = jnp.concatenate(pooled, axis=1)                               # (TB, H*C)

    # ---- Bias + LeakyReLU after the max (valid: per-channel bias, positive slope). ----
    z = feats + bcat_ref[...]
    act = jnp.maximum(z, leak * z)

    # ---- Linear head. ----
    lw = lw_ref[...]                                                      # (n_class, H*C)
    if n_class == 1:
        out = jnp.sum(act * lw, axis=1, keepdims=True)                    # VPU mul + lane reduce
    else:
        out = jax.lax.dot_general(act, lw, (((1,), (1,)), ((), ())),
                                  preferred_element_type=jnp.float32)     # (TB, n_class)
    o_ref[...] = (out + lb_ref[...]).astype(o_ref.dtype)                  # ONE full store


def _choose_block_batch(B, L, max_rows=1024):
    """Pick TB sequences per grid step: TB divides B, TB == B or TB % 8 == 0 (sublane-legal
    output block), and TB*L rows stay within a modest VMEM row budget."""
    valid = [tb for tb in range(1, B + 1) if B % tb == 0 and (tb == B or tb % 8 == 0)]
    fitting = [tb for tb in valid if tb * L <= max_rows]
    return max(fitting) if fitting else min(valid)


def pack_params(params, kernel_heights, n_class):
    """One-time packing (hoisted out of the forward path): bf16 table/weights, tap-grouped
    conv weight slab, sorted-head bias/linear column layout."""
    H = len(kernel_heights)
    C = params["conv_w"][0].shape[2]
    order = sorted(range(H), key=lambda h: kernel_heights[h])             # stable sort by kh
    kh_sorted = [kernel_heights[h] for h in order]
    max_kh = kh_sorted[-1]

    # Embedding table: bf16, vocab rows padded to the bf16 sublane tile (16).
    V, _ = params["embedding"].shape
    V_pad = -(-V // 16) * 16
    emb = params["embedding"].astype(jnp.bfloat16)
    if V_pad != V:
        emb = jnp.pad(emb, ((0, V_pad - V), (0, 0)))

    # Conv weights grouped by tap offset i, heads (sorted by kh) sharing that offset side-by-side.
    slabs = []
    for i in range(max_kh):
        for h in range(H):
            if kh_sorted[h] > i:
                slabs.append(params["conv_w"][order[h]][i])               # (E, C)
    w_packed = jnp.concatenate(slabs, axis=1).astype(jnp.bfloat16)        # (E, sum(kh)*C)

    bcat = jnp.concatenate([params["conv_b"][order[h]] for h in range(H)]).reshape(1, H * C)
    # Permute the linear weight columns to match the kernel's sorted-head feature order.
    lw = jnp.concatenate(
        [params["lin_w"][:, order[h] * C:(order[h] + 1) * C] for h in range(H)], axis=1)
    lb = params["lin_b"].reshape(1, n_class)

    return {"emb": emb, "w_packed": w_packed, "bcat": bcat, "lw": lw, "lb": lb}


def cnn_base_forward(tokens, packed, *, kernel_heights, n_class):
    B, L = tokens.shape
    E = packed["emb"].shape[1]
    V_pad = packed["emb"].shape[0]
    H = len(kernel_heights)
    C = packed["bcat"].shape[1] // H
    sum_cols = packed["w_packed"].shape[1]
    kh_sorted = tuple(sorted(kernel_heights))
    assert L >= kh_sorted[-1], "sequence length must be >= largest kernel height"

    TB = _choose_block_batch(B, L)                                        # sequences per grid step
    TM = TB * L
    grid = (B // TB,)
    tokens2d = tokens.reshape(B * L, 1)                                   # flat row axis, lane 1

    kernel = functools.partial(
        fused_cnn_kernel, kh_sorted=kh_sorted, TB=TB, L=L, C=C,
        n_class=n_class, leak=0.01)

    out = pl.pallas_call(
        kernel,
        out_shape=jax.ShapeDtypeStruct((B, n_class), jnp.float32),
        grid_spec=pltpu.PrefetchScalarGridSpec(
            num_scalar_prefetch=0,
            grid=grid,
            in_specs=[
                pl.BlockSpec((TM, 1), lambda i: (i, 0)),                  # token ids (per block)
                pl.BlockSpec((V_pad, E), lambda i: (0, 0)),               # resident bf16 table
                pl.BlockSpec((E, sum_cols), lambda i: (0, 0)),            # resident conv taps
                pl.BlockSpec((1, H * C), lambda i: (0, 0)),               # conv biases
                pl.BlockSpec((n_class, H * C), lambda i: (0, 0)),         # linear weight
                pl.BlockSpec((1, n_class), lambda i: (0, 0)),             # linear bias
            ],
            out_specs=pl.BlockSpec((TB, n_class), lambda i: (i, 0)),
        ),
        compiler_params=pltpu.CompilerParams(
            dimension_semantics=("parallel",)),                           # v7x: 2 TCs share batch
    )(tokens2d, packed["emb"], packed["w_packed"], packed["bcat"],
      packed["lw"], packed["lb"])                                         # (B, n_class)
    return out.reshape(-1)                                                # matches torch .view(-1)


def cnn_base_reference(tokens, params, kernel_heights):
    """Pure-JAX f32 reference with the exact PyTorch op order (bias + LeakyReLU before max)."""
    emb = jnp.take(params["embedding"], tokens, axis=0)
    B, L, _ = emb.shape
    feats = []
    for kh, w, b in zip(kernel_heights, params["conv_w"], params["conv_b"]):
        T = L - kh + 1
        conv = jnp.zeros((B, T, w.shape[2]), jnp.float32)
        for i in range(kh):
            conv = conv + jnp.einsum("bte,ec->btc", emb[:, i:i + T, :], w[i])
        z = conv + b[None, None, :]
        act = jnp.where(z >= 0, z, 0.01 * z)                              # LeakyReLU(0.01)
        feats.append(jnp.max(act, axis=1))                                # (B, C)
    all_out = jnp.concatenate(feats, axis=1)                              # (B, H*C)
    out = all_out @ params["lin_w"].T + params["lin_b"][None, :]
    return out.reshape(-1)


def xavier_uniform(key, shape, fan_in, fan_out):
    bound = (6.0 / (fan_in + fan_out)) ** 0.5
    return jax.random.uniform(key, shape, jnp.float32, -bound, bound)


def init_params(key, vocab_size, embedding_dim, out_channels, n_class, kernel_heights):
    keys = jax.random.split(key, 2 + len(kernel_heights))
    params = {}
    # nn.Embedding(vocab, E): xavier_uniform_ (p.dim() > 1); fan_in=E, fan_out=vocab.
    params["embedding"] = xavier_uniform(keys[0], (vocab_size, embedding_dim),
                                         fan_in=embedding_dim, fan_out=vocab_size)
    # Conv2d(1, C, (kh, E)) weight stored as (kh, E, C); fan_in=1*kh*E, fan_out=C*kh*E.
    params["conv_w"] = []
    params["conv_b"] = []
    for i, kh in enumerate(kernel_heights):
        params["conv_w"].append(
            xavier_uniform(keys[1 + i], (kh, embedding_dim, out_channels),
                           fan_in=kh * embedding_dim,
                           fan_out=out_channels * kh * embedding_dim))
        params["conv_b"].append(jnp.zeros((out_channels,), jnp.float32))
    dim = len(kernel_heights) * out_channels
    # Linear(H*C -> n_class) weight in torch layout (n_class, H*C).
    params["lin_w"] = xavier_uniform(keys[-1], (n_class, dim), fan_in=dim, fan_out=n_class)
    params["lin_b"] = jnp.zeros((n_class,), jnp.float32)
    return params


if __name__ == "__main__":
    vocab_size = 50
    embedding_dim = 32
    out_channels = 128
    n_class = 1
    kernel_heights = (3, 6, 12)
    B, L = 2, 16                       # L multiple of 8 and >= max kernel height

    key = jax.random.PRNGKey(0)
    pkey, tkey = jax.random.split(key)
    params = init_params(pkey, vocab_size, embedding_dim, out_channels,
                         n_class, kernel_heights)
    packed = pack_params(params, kernel_heights, n_class)     # one-time packing, outside forward
    tokens = jax.random.randint(tkey, (B, L), 0, vocab_size, dtype=jnp.int32)

    fwd = jax.jit(functools.partial(cnn_base_forward,
                                    kernel_heights=kernel_heights, n_class=n_class))
    out = jax.block_until_ready(fwd(tokens, packed))
    assert out.shape == (B * n_class,), out.shape

    # Pure-JAX f32 reference check (kernel uses bf16 MXU operands -> loose tolerance).
    ref = jax.block_until_ready(cnn_base_reference(tokens, params, kernel_heights))
    err = float(jnp.max(jnp.abs(out - ref)))
    assert err < 1e-2, f"kernel/reference mismatch: max abs err = {err}"

    print("KERNEL_OK")
</pallas_src>

<mosaic_0001>
module attributes {stable_mosaic.version = 11 : i64} {
  func.func @fused_cnn_kernel(%arg0: i32, %arg1: memref<32x1xi32, #tpu.memory_space<vmem>>, %arg2: memref<64x32xbf16, #tpu.memory_space<vmem>>, %arg3: memref<32x2688xbf16, #tpu.memory_space<vmem>>, %arg4: memref<1x384xf32, #tpu.memory_space<vmem>>, %arg5: memref<1x384xf32, #tpu.memory_space<vmem>>, %arg6: memref<1x1xf32, #tpu.memory_space<vmem>>, %arg7: memref<2x1xf32, #tpu.memory_space<vmem>>) attributes {dimension_semantics = [#tpu.dimension_semantics<parallel>], iteration_bounds = array<i64: 1>, scalar_prefetch = 0 : i64, scratch_operands = 0 : i64, tpu.core_type = #tpu.core_type<tc>, window_params = [{transform_indices = @transform_0, window_bounds = array<i64: 32, 1>}, {pipeline_mode = #tpu.pipeline_mode<synchronous>, transform_indices = @transform_1, window_bounds = array<i64: 64, 32>}, {pipeline_mode = #tpu.pipeline_mode<synchronous>, transform_indices = @transform_2, window_bounds = array<i64: 32, 2688>}, {pipeline_mode = #tpu.pipeline_mode<synchronous>, transform_indices = @transform_3, window_bounds = array<i64: 1, 384>}, {pipeline_mode = #tpu.pipeline_mode<synchronous>, transform_indices = @transform_4, window_bounds = array<i64: 1, 384>}, {pipeline_mode = #tpu.pipeline_mode<synchronous>, transform_indices = @transform_5, window_bounds = array<i64: 1, 1>}, {transform_indices = @transform_6, window_bounds = array<i64: 2, 1>}]} {
    %c0 = arith.constant 0 : index
    %c0_0 = arith.constant 0 : index
    %0 = vector.load %arg1[%c0, %c0_0] : memref<32x1xi32, #tpu.memory_space<vmem>>, vector<32x1xi32>
    %1 = tpu.iota {dimensions = array<i32: 1>} : vector<32x64xi32>
    %2 = vector.broadcast %0 : vector<32x1xi32> to vector<32x64xi32>
    %3 = arith.cmpi eq, %1, %2 : vector<32x64xi32>
    %cst = arith.constant 1.000000e+00 : f32
    %cst_1 = arith.constant 0.000000e+00 : f32
    %4 = vector.broadcast %cst : f32 to vector<32x64xf32>
    %5 = vector.broadcast %cst_1 : f32 to vector<32x64xf32>
    %6 = arith.select %3, %4, %5 : vector<32x64xi1>, vector<32x64xf32>
    %7 = arith.truncf %6 : vector<32x64xf32> to vector<32x64xbf16>
    %c0_2 = arith.constant 0 : index
    %c0_3 = arith.constant 0 : index
    %8 = vector.load %arg2[%c0_2, %c0_3] : memref<64x32xbf16, #tpu.memory_space<vmem>>, vector<64x32xbf16>
    %cst_4 = arith.constant dense<0.000000e+00> : vector<32x32xf32>
    %9 = tpu.matmul %7, %8, %cst_4 {dimension_numbers = #tpu.dot_dimension_numbers<[1], [0], [0], [1], [0, 0, 1, 1], [], []>} : vector<32x64xbf16>, vector<64x32xbf16>, vector<32x32xf32> -> vector<32x32xf32>
    %10 = arith.truncf %9 : vector<32x32xf32> to vector<32x32xbf16>
    %c0_5 = arith.constant 0 : index
    %c0_6 = arith.constant 0 : index
    %11 = vector.load %arg3[%c0_5, %c0_6] : memref<32x2688xbf16, #tpu.memory_space<vmem>>, vector<32x384xbf16>
    %cst_7 = arith.constant dense<0.000000e+00> : vector<32x384xf32>
    %12 = tpu.matmul %10, %11, %cst_7 {dimension_numbers = #tpu.dot_dimension_numbers<[1], [0], [0], [1], [0, 0, 1, 1], [], []>} : vector<32x32xbf16>, vector<32x384xbf16>, vector<32x384xf32> -> vector<32x384xf32>
    %13 = vector.extract_strided_slice %12 {offsets = [0, 0], sizes = [32, 128], strides = [1, 1]} : vector<32x384xf32> to vector<32x128xf32>
    %14 = vector.extract_strided_slice %12 {offsets = [0, 128], sizes = [32, 128], strides = [1, 1]} : vector<32x384xf32> to vector<32x128xf32>
    %15 = vector.extract_strided_slice %12 {offsets = [0, 256], sizes = [32, 128], strides = [1, 1]} : vector<32x384xf32> to vector<32x128xf32>
    %c31_i32 = arith.constant 31 : i32
    %16 = tpu.dynamic_rotate %9 by %c31_i32 dim 0 : vector<32x32xf32>, i32 -> vector<32x32xf32>
    %17 = arith.truncf %16 : vector<32x32xf32> to vector<32x32xbf16>
    %c0_8 = arith.constant 0 : index
    %c384 = arith.constant 384 : index
    %18 = vector.load %arg3[%c0_8, %c384] : memref<32x2688xbf16, #tpu.memory_space<vmem>>, vector<32x384xbf16>
    %cst_9 = arith.constant dense<0.000000e+00> : vector<32x384xf32>
    %19 = tpu.matmul %17, %18, %cst_9 {dimension_numbers = #tpu.dot_dimension_numbers<[1], [0], [0], [1], [0, 0, 1, 1], [], []>} : vector<32x32xbf16>, vector<32x384xbf16>, vector<32x384xf32> -> vector<32x384xf32>
    %20 = vector.extract_strided_slice %19 {offsets = [0, 0], sizes = [32, 128], strides = [1, 1]} : vector<32x384xf32> to vector<32x128xf32>
    %21 = arith.addf %13, %20 : vector<32x128xf32>
    %22 = vector.extract_strided_slice %19 {offsets = [0, 128], sizes = [32, 128], strides = [1, 1]} : vector<32x384xf32> to vector<32x128xf32>
    %23 = arith.addf %14, %22 : vector<32x128xf32>
    %24 = vector.extract_strided_slice %19 {offsets = [0, 256], sizes = [32, 128], strides = [1, 1]} : vector<32x384xf32> to vector<32x128xf32>
    %25 = arith.addf %15, %24 : vector<32x128xf32>
    %c30_i32 = arith.constant 30 : i32
    %26 = tpu.dynamic_rotate %9 by %c30_i32 dim 0 : vector<32x32xf32>, i32 -> vector<32x32xf32>
    %27 = arith.truncf %26 : vector<32x32xf32> to vector<32x32xbf16>
    %c0_10 = arith.constant 0 : index
    %c768 = arith.constant 768 : index
    %28 = vector.load %arg3[%c0_10, %c768] : memref<32x2688xbf16, #tpu.memory_space<vmem>>, vector<32x384xbf16>
    %cst_11 = arith.constant dense<0.000000e+00> : vector<32x384xf32>
    %29 = tpu.matmul %27, %28, %cst_11 {dimension_numbers = #tpu.dot_dimension_numbers<[1], [0], [0], [1], [0, 0, 1, 1], [], []>} : vector<32x32xbf16>, vector<32x384xbf16>, vector<32x384xf32> -> vector<32x384xf32>
    %30 = vector.extract_strided_slice %29 {offsets = [0, 0], sizes = [32, 128], strides = [1, 1]} : vector<32x384xf32> to vector<32x128xf32>
    %31 = arith.addf %21, %30 : vector<32x128xf32>
    %32 = vector.extract_strided_slice %29 {offsets = [0, 128], sizes = [32, 128], strides = [1, 1]} : vector<32x384xf32> to vector<32x128xf32>
    %33 = arith.addf %23, %32 : vector<32x128xf32>
    %34 = vector.extract_strided_slice %29 {offsets = [0, 256], sizes = [32, 128], strides = [1, 1]} : vector<32x384xf32> to vector<32x128xf32>
    %35 = arith.addf %25, %34 : vector<32x128xf32>
    %c29_i32 = arith.constant 29 : i32
    %36 = tpu.dynamic_rotate %9 by %c29_i32 dim 0 : vector<32x32xf32>, i32 -> vector<32x32xf32>
    %37 = arith.truncf %36 : vector<32x32xf32> to vector<32x32xbf16>
    %c0_12 = arith.constant 0 : index
    %c1152 = arith.constant 1152 : index
    %38 = vector.load %arg3[%c0_12, %c1152] : memref<32x2688xbf16, #tpu.memory_space<vmem>>, vector<32x256xbf16>
    %cst_13 = arith.constant dense<0.000000e+00> : vector<32x256xf32>
    %39 = tpu.matmul %37, %38, %cst_13 {dimension_numbers = #tpu.dot_dimension_numbers<[1], [0], [0], [1], [0, 0, 1, 1], [], []>} : vector<32x32xbf16>, vector<32x256xbf16>, vector<32x256xf32> -> vector<32x256xf32>
    %40 = vector.extract_strided_slice %39 {offsets = [0, 0], sizes = [32, 128], strides = [1, 1]} : vector<32x256xf32> to vector<32x128xf32>
    %41 = arith.addf %33, %40 : vector<32x128xf32>
    %42 = vector.extract_strided_slice %39 {offsets = [0, 128], sizes = [32, 128], strides = [1, 1]} : vector<32x256xf32> to vector<32x128xf32>
    %43 = arith.addf %35, %42 : vector<32x128xf32>
    %c28_i32 = arith.constant 28 : i32
    %44 = tpu.dynamic_rotate %9 by %c28_i32 dim 0 : vector<32x32xf32>, i32 -> vector<32x32xf32>
    %45 = arith.truncf %44 : vector<32x32xf32> to vector<32x32xbf16>
    %c0_14 = arith.constant 0 : index
    %c1408 = arith.constant 1408 : index
    %46 = vector.load %arg3[%c0_14, %c1408] : memref<32x2688xbf16, #tpu.memory_space<vmem>>, vector<32x256xbf16>
    %cst_15 = arith.constant dense<0.000000e+00> : vector<32x256xf32>
    %47 = tpu.matmul %45, %46, %cst_15 {dimension_numbers = #tpu.dot_dimension_numbers<[1], [0], [0], [1], [0, 0, 1, 1], [], []>} : vector<32x32xbf16>, vector<32x256xbf16>, vector<32x256xf32> -> vector<32x256xf32>
    %48 = vector.extract_strided_slice %47 {offsets = [0, 0], sizes = [32, 128], strides = [1, 1]} : vector<32x256xf32> to vector<32x128xf32>
    %49 = arith.addf %41, %48 : vector<32x128xf32>
    %50 = vector.extract_strided_slice %47 {offsets = [0, 128], sizes = [32, 128], strides = [1, 1]} : vector<32x256xf32> to vector<32x128xf32>
    %51 = arith.addf %43, %50 : vector<32x128xf32>
    %c27_i32 = arith.constant 27 : i32
    %52 = tpu.dynamic_rotate %9 by %c27_i32 dim 0 : vector<32x32xf32>, i32 -> vector<32x32xf32>
    %53 = arith.truncf %52 : vector<32x32xf32> to vector<32x32xbf16>
    %c0_16 = arith.constant 0 : index
    %c1664 = arith.constant 1664 : index
    %54 = vector.load %arg3[%c0_16, %c1664] : memref<32x2688xbf16, #tpu.memory_space<vmem>>, vector<32x256xbf16>
    %cst_17 = arith.constant dense<0.000000e+00> : vector<32x256xf32>
    %55 = tpu.matmul %53, %54, %cst_17 {dimension_numbers = #tpu.dot_dimension_numbers<[1], [0], [0], [1], [0, 0, 1, 1], [], []>} : vector<32x32xbf16>, vector<32x256xbf16>, vector<32x256xf32> -> vector<32x256xf32>
    %56 = vector.extract_strided_slice %55 {offsets = [0, 0], sizes = [32, 128], strides = [1, 1]} : vector<32x256xf32> to vector<32x128xf32>
    %57 = arith.addf %49, %56 : vector<32x128xf32>
    %58 = vector.extract_strided_slice %55 {offsets = [0, 128], sizes = [32, 128], strides = [1, 1]} : vector<32x256xf32> to vector<32x128xf32>
    %59 = arith.addf %51, %58 : vector<32x128xf32>
    %c26_i32 = arith.constant 26 : i32
    %60 = tpu.dynamic_rotate %9 by %c26_i32 dim 0 : vector<32x32xf32>, i32 -> vector<32x32xf32>
    %61 = arith.truncf %60 : vector<32x32xf32> to vector<32x32xbf16>
    %c0_18 = arith.constant 0 : index
    %c1920 = arith.constant 1920 : index
    %62 = vector.load %arg3[%c0_18, %c1920] : memref<32x2688xbf16, #tpu.memory_space<vmem>>, vector<32x128xbf16>
    %cst_19 = arith.constant dense<0.000000e+00> : vector<32x128xf32>
    %63 = tpu.matmul %61, %62, %cst_19 {dimension_numbers = #tpu.dot_dimension_numbers<[1], [0], [0], [1], [0, 0, 1, 1], [], []>} : vector<32x32xbf16>, vector<32x128xbf16>, vector<32x128xf32> -> vector<32x128xf32>
    %64 = arith.addf %59, %63 : vector<32x128xf32>
    %c25_i32 = arith.constant 25 : i32
    %65 = tpu.dynamic_rotate %9 by %c25_i32 dim 0 : vector<32x32xf32>, i32 -> vector<32x32xf32>
    %66 = arith.truncf %65 : vector<32x32xf32> to vector<32x32xbf16>
    %c0_20 = arith.constant 0 : index
    %c2048 = arith.constant 2048 : index
    %67 = vector.load %arg3[%c0_20, %c2048] : memref<32x2688xbf16, #tpu.memory_space<vmem>>, vector<32x128xbf16>
    %cst_21 = arith.constant dense<0.000000e+00> : vector<32x128xf32>
    %68 = tpu.matmul %66, %67, %cst_21 {dimension_numbers = #tpu.dot_dimension_numbers<[1], [0], [0], [1], [0, 0, 1, 1], [], []>} : vector<32x32xbf16>, vector<32x128xbf16>, vector<32x128xf32> -> vector<32x128xf32>
    %69 = arith.addf %64, %68 : vector<32x128xf32>
    %c24_i32 = arith.constant 24 : i32
    %70 = tpu.dynamic_rotate %9 by %c24_i32 dim 0 : vector<32x32xf32>, i32 -> vector<32x32xf32>
    %71 = arith.truncf %70 : vector<32x32xf32> to vector<32x32xbf16>
    %c0_22 = arith.constant 0 : index
    %c2176 = arith.constant 2176 : index
    %72 = vector.load %arg3[%c0_22, %c2176] : memref<32x2688xbf16, #tpu.memory_space<vmem>>, vector<32x128xbf16>
    %cst_23 = arith.constant dense<0.000000e+00> : vector<32x128xf32>
    %73 = tpu.matmul %71, %72, %cst_23 {dimension_numbers = #tpu.dot_dimension_numbers<[1], [0], [0], [1], [0, 0, 1, 1], [], []>} : vector<32x32xbf16>, vector<32x128xbf16>, vector<32x128xf32> -> vector<32x128xf32>
    %74 = arith.addf %69, %73 : vector<32x128xf32>
    %c23_i32 = arith.constant 23 : i32
    %75 = tpu.dynamic_rotate %9 by %c23_i32 dim 0 : vector<32x32xf32>, i32 -> vector<32x32xf32>
    %76 = arith.truncf %75 : vector<32x32xf32> to vector<32x32xbf16>
    %c0_24 = arith.constant 0 : index
    %c2304 = arith.constant 2304 : index
    %77 = vector.load %arg3[%c0_24, %c2304] : memref<32x2688xbf16, #tpu.memory_space<vmem>>, vector<32x128xbf16>
    %cst_25 = arith.constant dense<0.000000e+00> : vector<32x128xf32>
    %78 = tpu.matmul %76, %77, %cst_25 {dimension_numbers = #tpu.dot_dimension_numbers<[1], [0], [0], [1], [0, 0, 1, 1], [], []>} : vector<32x32xbf16>, vector<32x128xbf16>, vector<32x128xf32> -> vector<32x128xf32>
    %79 = arith.addf %74, %78 : vector<32x128xf32>
    %c22_i32 = arith.constant 22 : i32
    %80 = tpu.dynamic_rotate %9 by %c22_i32 dim 0 : vector<32x32xf32>, i32 -> vector<32x32xf32>
    %81 = arith.truncf %80 : vector<32x32xf32> to vector<32x32xbf16>
    %c0_26 = arith.constant 0 : index
    %c2432 = arith.constant 2432 : index
    %82 = vector.load %arg3[%c0_26, %c2432] : memref<32x2688xbf16, #tpu.memory_space<vmem>>, vector<32x128xbf16>
    %cst_27 = arith.constant dense<0.000000e+00> : vector<32x128xf32>
    %83 = tpu.matmul %81, %82, %cst_27 {dimension_numbers = #tpu.dot_dimension_numbers<[1], [0], [0], [1], [0, 0, 1, 1], [], []>} : vector<32x32xbf16>, vector<32x128xbf16>, vector<32x128xf32> -> vector<32x128xf32>
    %84 = arith.addf %79, %83 : vector<32x128xf32>
    %c21_i32 = arith.constant 21 : i32
    %85 = tpu.dynamic_rotate %9 by %c21_i32 dim 0 : vector<32x32xf32>, i32 -> vector<32x32xf32>
    %86 = arith.truncf %85 : vector<32x32xf32> to vector<32x32xbf16>
    %c0_28 = arith.constant 0 : index
    %c2560 = arith.constant 2560 : index
    %87 = vector.load %arg3[%c0_28, %c2560] : memref<32x2688xbf16, #tpu.memory_space<vmem>>, vector<32x128xbf16>
    %cst_29 = arith.constant dense<0.000000e+00> : vector<32x128xf32>
    %88 = tpu.matmul %86, %87, %cst_29 {dimension_numbers = #tpu.dot_dimension_numbers<[1], [0], [0], [1], [0, 0, 1, 1], [], []>} : vector<32x32xbf16>, vector<32x128xbf16>, vector<32x128xf32> -> vector<32x128xf32>
    %89 = arith.addf %84, %88 : vector<32x128xf32>
    %90 = tpu.iota {dimensions = array<i32: 0>} : vector<16x128xi32>
    %91 = vector.shape_cast %31 : vector<32x128xf32> to vector<2x16x128xf32>
    %92 = vector.shape_cast %90 : vector<16x128xi32> to vector<1x16x128xi32>
    %c14_i32 = arith.constant 14 : i32
    %93 = vector.broadcast %c14_i32 : i32 to vector<1x16x128xi32>
    %94 = arith.cmpi slt, %92, %93 : vector<1x16x128xi32>
    %cst_30 = arith.constant 0xFF800000 : f32
    %95 = vector.shape_cast %94 : vector<1x16x128xi1> to vector<1x16x128xi1>
    %96 = vector.broadcast %95 : vector<1x16x128xi1> to vector<2x16x128xi1>
    %97 = vector.broadcast %cst_30 : f32 to vector<2x16x128xf32>
    %98 = arith.select %96, %91, %97 : vector<2x16x128xi1>, vector<2x16x128xf32>
    %cst_31 = arith.constant dense<0xFF800000> : vector<2x128xf32>
    %99 = vector.multi_reduction <maximumf>, %98, %cst_31 [1] : vector<2x16x128xf32> to vector<2x128xf32>
    %100 = vector.shape_cast %57 : vector<32x128xf32> to vector<2x16x128xf32>
    %101 = vector.shape_cast %90 : vector<16x128xi32> to vector<1x16x128xi32>
    %c11_i32 = arith.constant 11 : i32
    %102 = vector.broadcast %c11_i32 : i32 to vector<1x16x128xi32>
    %103 = arith.cmpi slt, %101, %102 : vector<1x16x128xi32>
    %cst_32 = arith.constant 0xFF800000 : f32
    %104 = vector.shape_cast %103 : vector<1x16x128xi1> to vector<1x16x128xi1>
    %105 = vector.broadcast %104 : vector<1x16x128xi1> to vector<2x16x128xi1>
    %106 = vector.broadcast %cst_32 : f32 to vector<2x16x128xf32>
    %107 = arith.select %105, %100, %106 : vector<2x16x128xi1>, vector<2x16x128xf32>
    %cst_33 = arith.constant dense<0xFF800000> : vector<2x128xf32>
    %108 = vector.multi_reduction <maximumf>, %107, %cst_33 [1] : vector<2x16x128xf32> to vector<2x128xf32>
    %109 = vector.shape_cast %89 : vector<32x128xf32> to vector<2x16x128xf32>
    %110 = vector.shape_cast %90 : vector<16x128xi32> to vector<1x16x128xi32>
    %c5_i32 = arith.constant 5 : i32
    %111 = vector.broadcast %c5_i32 : i32 to vector<1x16x128xi32>
    %112 = arith.cmpi slt, %110, %111 : vector<1x16x128xi32>
    %cst_34 = arith.constant 0xFF800000 : f32
    %113 = vector.shape_cast %112 : vector<1x16x128xi1> to vector<1x16x128xi1>
    %114 = vector.broadcast %113 : vector<1x16x128xi1> to vector<2x16x128xi1>
    %115 = vector.broadcast %cst_34 : f32 to vector<2x16x128xf32>
    %116 = arith.select %114, %109, %115 : vector<2x16x128xi1>, vector<2x16x128xf32>
    %cst_35 = arith.constant dense<0xFF800000> : vector<2x128xf32>
    %117 = vector.multi_reduction <maximumf>, %116, %cst_35 [1] : vector<2x16x128xf32> to vector<2x128xf32>
    %118 = tpu.concatenate %99, %108, %117 in 1 : vector<2x128xf32>, vector<2x128xf32>, vector<2x128xf32> -> vector<2x384xf32>
    %c0_36 = arith.constant 0 : index
    %c0_37 = arith.constant 0 : index
    %119 = vector.load %arg4[%c0_36, %c0_37] : memref<1x384xf32, #tpu.memory_space<vmem>>, vector<1x384xf32>
    %120 = vector.broadcast %119 : vector<1x384xf32> to vector<2x384xf32>
    %121 = arith.addf %118, %120 : vector<2x384xf32>
    %cst_38 = arith.constant 0.00999999977 : f32
    %122 = vector.broadcast %cst_38 : f32 to vector<2x384xf32>
    %123 = arith.mulf %122, %121 : vector<2x384xf32>
    %124 = arith.maximumf %121, %123 : vector<2x384xf32>
    %c0_39 = arith.constant 0 : index
    %c0_40 = arith.constant 0 : index
    %125 = vector.load %arg5[%c0_39, %c0_40] : memref<1x384xf32, #tpu.memory_space<vmem>>, vector<1x384xf32>
    %126 = vector.broadcast %125 : vector<1x384xf32> to vector<2x384xf32>
    %127 = arith.mulf %124, %126 : vector<2x384xf32>
    %cst_41 = arith.constant dense<0.000000e+00> : vector<2xf32>
    %128 = vector.multi_reduction <add>, %127, %cst_41 [1] : vector<2x384xf32> to vector<2xf32>
    %129 = vector.shape_cast %128 : vector<2xf32> to vector<2x1xf32>
    %c0_42 = arith.constant 0 : index
    %c0_43 = arith.constant 0 : index
    %130 = vector.load %arg6[%c0_42, %c0_43] : memref<1x1xf32, #tpu.memory_space<vmem>>, vector<1x1xf32>
    %131 = vector.broadcast %130 : vector<1x1xf32> to vector<2x1xf32>
    %132 = arith.addf %129, %131 : vector<2x1xf32>
    %c0_44 = arith.constant 0 : index
    %c0_45 = arith.constant 0 : index
    %133 = vector.load %arg7[%c0_44, %c0_45] : memref<2x1xf32, #tpu.memory_space<vmem>>, vector<2x1xf32>
    tpu.vector_store %arg7[%c0_44, %c0_45], %132 {strides = array<i32>} : memref<2x1xf32, #tpu.memory_space<vmem>>, vector<2x1xf32>,
    return
  }
  func.func @transform_0(%arg0: i32) -> (i32, i32) {
    %c0_i32 = arith.constant 0 : i32
    %c0_i32_0 = arith.constant 0 : i32
    return %arg0, %c0_i32 : i32, i32
  }
  func.func @transform_1(%arg0: i32) -> (i32, i32) {
    %c0_i32 = arith.constant 0 : i32
    %c0_i32_0 = arith.constant 0 : i32
    %c0_i32_1 = arith.constant 0 : i32
    return %c0_i32, %c0_i32_0 : i32, i32
  }
  func.func @transform_2(%arg0: i32) -> (i32, i32) {
    %c0_i32 = arith.constant 0 : i32
    %c0_i32_0 = arith.constant 0 : i32
    %c0_i32_1 = arith.constant 0 : i32
    return %c0_i32, %c0_i32_0 : i32, i32
  }
  func.func @transform_3(%arg0: i32) -> (i32, i32) {
    %c0_i32 = arith.constant 0 : i32
    %c0_i32_0 = arith.constant 0 : i32
    %c0_i32_1 = arith.constant 0 : i32
    return %c0_i32, %c0_i32_0 : i32, i32
  }
  func.func @transform_4(%arg0: i32) -> (i32, i32) {
    %c0_i32 = arith.constant 0 : i32
    %c0_i32_0 = arith.constant 0 : i32
    %c0_i32_1 = arith.constant 0 : i32
    return %c0_i32, %c0_i32_0 : i32, i32
  }
  func.func @transform_5(%arg0: i32) -> (i32, i32) {
    %c0_i32 = arith.constant 0 : i32
    %c0_i32_0 = arith.constant 0 : i32
    %c0_i32_1 = arith.constant 0 : i32
    return %c0_i32, %c0_i32_0 : i32, i32
  }
  func.func @transform_6(%arg0: i32) -> (i32, i32) {
    %c0_i32 = arith.constant 0 : i32
    %c0_i32_0 = arith.constant 0 : i32
    return %arg0, %c0_i32 : i32, i32
  }
}

</mosaic_0001>

<bundles_post_ra>
// kernel: cnn_base_forward.1
= control target key start
LH: loop header
LB: loop body
LE: loop exit
PB: predicated region body
PF: predicated region fallthrough
CT: control target
= control target key end

     0   :  { %s2231_s0 = inlined_call_operand.vmem [shape: s32[32,1], index: 0, kind: input, shape index: {}]   ;;  %s2232_s1 = inlined_call_operand.vmem [shape: bf16[64,32], index: 1, kind: input, shape index: {}]   ;;  %s2233_s2 = inlined_call_operand.hbm [shape: bf16[32,2688], index: 2, kind: input, shape index: {}]   ;;  %s2234_s3 = inlined_call_operand.vmem [shape: f32[1,384], index: 3, kind: input, shape index: {}]   ;;  %s2235_s4 = inlined_call_operand.vmem [shape: f32[1,384], index: 4, kind: input, shape index: {}]   ;;  %s2236_s5 = inlined_call_operand.<no memory space> [shape: f32[1,1], index: 5, kind: input, shape index: {}]   ;;  %s2237_s6 = inlined_call_operand.vmem [shape: f32[2,1], index: 6, kind: output, shape index: {}]  }
   0x1   :  { %v11_v0 = vstv %s2236_s5 }
   0x2   :  { %12 = vst [vmem:[#allocation2] sm:$0x1] %v11_v0 }
   0x3   :  { %13 = vsyncpa [#allocation4], 0  ;;  %s1883_s23 = smov [#allocation3]  }
   0x4   :  { %s23_s24 = sshll.u32 %s1883_s23, 4  ;;  %s24_s24 = int_to_ptr.vmem [resolvable:$true] %s23_s24 }
   0x5   :  { %s1869_s25 = scalar_lea.vmem %s24_s24, 5376  ;;  %p1874_p1 = scmp.lt.s32.totalorder %s24_s24, %s24_s24 }
   0x6   :  { %p1870_p0 = scmp.ne.s32.totalorder %s24_s24, %s1869_s25  ;;  %p1875_p2 = scmp.lt.s32.totalorder %s1869_s25, %s1869_s25 }
   0x8   :  { %p1876_p3 = por %p1875_p2, %p1874_p1 }
   0xa   :  { %p1877_p4 = pnand %p1876_p3, %p1870_p0 }
   0xc   :  { %1880 = shalt.err (!%p1877_p4)
}
   0xd   :  { %s1884_s26 = smov 1344   ;;  %s1885_s27 = smov 84  }
   0xe   :  { %29 = dma.hbm_to_vmem [thread:$0]  %s2233_s2, 5376, %s24_s24, [#allocation4], %s1884_s26, %s1884_s26, %s1885_s27  }
   0xf   :  { %1881 = dma.done.wait [#allocation4], 5376  }
  0x10   :  { %1882 = vsyncadd [#allocation4], 4294961920  ;;  %v1886_v1 = vmov 0   ;;  %v42_v2 = vld [vmem:[%s2231_s0 + $0x10] sm:$0xff]  ;;  %v40_v3 = vld [vmem:[%s2231_s0] sm:$0xff]  ;;  %v44_v10 = vlaneseq  ;;  %vm100_vm4 = vcmask 523264  }
  0x11   :  { %1802 = vset.pattern.permute.xlu1 %v1886_v1  ;;  %1801 = vset.pattern.permute.xlu0 %v1886_v1  ;;  %v43_v4 = vld [vmem:[%s2231_s0 + $0x18] sm:$0xff]  ;;  %v41_v5 = vld [vmem:[%s2231_s0 + $0x8] sm:$0xff]  ;;  %v1804_v7 = vld [vmem:[%s2232_s1 + $0x10] sm:$0xff]   ;;  %v1887_v16 = vmov 0.0   ;;  %vm198_vm5 = vcmask 261120   ;;  %vm1511_vm14 = vcmask 1041409  }
  0x12   :  { %237 = vmatprep.mubr.bf16.mxu1 %v1886_v1  ;;  %53 = vperm.xlu1 %1802, %v42_v2   ;;  %v1803_v6 = vld [vmem:[%s2232_s1 + $0x18] sm:$0xff]   ;;  %v1805_v8 = vld [vmem:[%s2232_s1 + $0x8] sm:$0xff]   ;;  %v1806_v9 = vld [vmem:[%s2232_s1] sm:$0xff]   ;;  %v45_v11 = vand.u32 127, %v44_v10  ;;  %v1960_v33 = vshrl.u32 %v44_v10, 7 }
  0x13   :  { %47 = vperm.xlu0 %1801, %v40_v3   ;;  %1712 = vmatprep.subr.bf16.mxu0 %v1803_v6  ;;  %v1807_v23 = vld [vmem:[#allocation3 + $0xac] ss:$84 sps:$4 sm:$0xff]   ;;  %v1809_v24 = vld [vmem:[#allocation3 + $0xa8] ss:$84 sps:$4 sm:$0xff]   ;;  %v1810_v25 = vld [vmem:[#allocation3 + $0xb0] ss:$84 sps:$4 sm:$0xff]  }
  0x14   :  { %1713 = vmatpush3.bf16.msra.mxu0 %v1803_v6  ;;  %217 = vmatprep.subr.bf16.mxu1 %v1807_v23  ;;  %v1811_v26 = vld [vmem:[#allocation3 + $0x4] ss:$84 sps:$4 sm:$0xff]   ;;  %v1813_v27 = vld [vmem:[#allocation3] ss:$84 sps:$4 sm:$0xff]   ;;  %v1814_v28 = vld [vmem:[#allocation3 + $0x8] ss:$84 sps:$4 sm:$0xff]  }
  0x15   :  { %1714 = vmatprep.subr.bf16.mxu0 %v1804_v7  ;;  %218 = vmatpush1.bf16.msra.mxu1 %v1809_v24  ;;  %v1817_v29 = vld [vmem:[#allocation3 + $0xb8] ss:$84 sps:$4 sm:$0xff]   ;;  %v1818_v30 = vld [vmem:[#allocation3 + $0xbc] ss:$84 sps:$4 sm:$0xff]   ;;  %v1815_v36 = vld [vmem:[#allocation3 + $0xb4] ss:$84 sps:$4 sm:$0xff]  }
  0x16   :  { %56 = vperm.xlu1 %1802, %v43_v4   ;;  %219 = vmatprep.subr.bf16.mxu1 %v1811_v26  ;;  %vm313_vm6 = vcmp.lt.s32.totalorder %v1960_v33, 7  ;;  %v1819_v42 = vld [vmem:[#allocation3 + $0x14] ss:$84 sps:$4 sm:$0xff]   ;;  %v1822_v46 = vld [vmem:[#allocation3 + $0x10] ss:$84 sps:$4 sm:$0xff]   ;;  %vm484_vm7 = vcmp.lt.s32.totalorder %v1960_v33, 6 }
  0x17   :  { %50 = vperm.xlu0 %1801, %v41_v5   ;;  %v1820_v48 = vld [vmem:[#allocation3 + $0xc] ss:$84 sps:$4 sm:$0xff]   ;;  %v1829_v49 = vld [vmem:[#allocation3 + $0xc8] ss:$84 sps:$4 sm:$0xff]   ;;  %v1825_v50 = vld [vmem:[#allocation3 + $0xc4] ss:$84 sps:$4 sm:$0xff]  }
  0x18   :  { %1715 = vmatpush3.bf16.msra.mxu0 %v1804_v7  ;;  %v1823_v53 = vld [vmem:[#allocation3 + $0xc0] ss:$84 sps:$4 sm:$0xff]   ;;  %v1828_v55 = vld [vmem:[#allocation3 + $0x1c] ss:$84 sps:$4 sm:$0xff]   ;;  %v1826_v57 = vld [vmem:[#allocation3 + $0x18] ss:$84 sps:$4 sm:$0xff]  }
  0x19   :  { %1716 = vmatprep.subr.bf16.mxu0 %v1805_v8  ;;  %220 = vmatpush1.bf16.msra.mxu1 %v1813_v27  ;;  %v1833_v60 = vld [vmem:[#allocation3 + $0xd8] ss:$84 sps:$4 sm:$0xff]   ;;  %v1830_v0 = vld [vmem:[#allocation3 + $0x20] ss:$84 sps:$4 sm:$0xff]   ;;  %v1836_v5 = vld [vmem:[#allocation3 + $0x30] ss:$84 sps:$4 sm:$0xff]  }
  0x1a   :  { %378 = vmatprep.subr.bf16.mxu1 %v1817_v29  ;;  %v1831_v3 = vld [vmem:[#allocation3 + $0xd4] ss:$84 sps:$4 sm:$0xff]   ;;  %v1839_v6 = vld [vmem:[#allocation3 + $0xd0] ss:$84 sps:$4 sm:$0xff]   ;;  %v1834_v7 = vld [vmem:[#allocation3 + $0x2c] ss:$84 sps:$4 sm:$0xff]  }
  0x1b   :  { %v1846_v10 = vld [vmem:[#allocation3 + $0xe4] ss:$84 sps:$4 sm:$0xff]   ;;  %vm757_vm8 = vcmp.lt.s32.totalorder %v1960_v33, 4  ;;  %v1845_v27 = vld [vmem:[#allocation3 + $0xe0] ss:$84 sps:$4 sm:$0xff]   ;;  %vm655_vm9 = vcmp.lt.s32.totalorder %v1960_v33, 5 }
  0x1c   :  { %1717 = vmatpush3.bf16.msra.mxu0 %v1805_v8  ;;  %v1840_v23 = vld [vmem:[#allocation3 + $0x24] ss:$84 sps:$4 sm:$0xff]   ;;  %vm961_vm10 = vcmp.lt.s32.totalorder %v1960_v33, 2  ;;  %vm1047_vm11 = vcmp.lt.s32.totalorder %v1960_v33, 1  ;;  %vm859_vm12 = vcmp.lt.s32.totalorder %v1960_v33, 3 }
  0x1d   :  { %1718 = vmatprep.subr.bf16.mxu0 %v1806_v9 }
  0x20   :  { %1719 = vmatpush3.bf16.msra.mxu0 %v1806_v9 }
  0x21   :  { %1724 = vmatprep.subr.bf16.mxu0 %v1810_v25 }
  0x8d   :  { %v54_v12 = vpop.permute.xlu1 %53 }
  0x8e   :  { %v48_v13 = vpop.permute.xlu0 %47  ;;  %vm60_vm0 = vcmp.eq.s32.totalorder %v45_v11, %v54_v12 }
  0x8f   :  { %vm58_vm1 = vcmp.eq.s32.totalorder %v45_v11, %v48_v13  ;;  %v64_v17 = vsel %vm60_vm0, 1.0, %v1887_v16  ;;  %vm1568_vm0 = vcmask 1041408  }
  0x90   :  { %v62_v18 = vsel %vm58_vm1, 1.0, %v1887_v16  ;;  %vm1584_vm1 = vcmask 1024  }
  0x91   :  { %v57_v14 = vpop.permute.xlu1 %56 }
  0x92   :  { %v51_v15 = vpop.permute.xlu0 %50  ;;  %vm61_vm2 = vcmp.eq.s32.totalorder %v45_v11, %v57_v14 }
  0x93   :  { %vm59_vm3 = vcmp.eq.s32.totalorder %v45_v11, %v51_v15  ;;  %v65_v19 = vsel %vm61_vm2, 1.0, %v1887_v16 }
  0x94   :  { %v63_v20 = vsel %vm59_vm3, 1.0, %v1887_v16  ;;  %v67_v21 = vpack.c.bf16 %v65_v19, %v64_v17  ;;  %v1837_v17 = vld [vmem:[#allocation3 + $0xcc] ss:$84 sps:$4 sm:$0xff]  }
  0x95   :  { %v66_v22 = vpack.c.bf16 %v63_v20, %v62_v18  ;;  %v1842_v18 = vld [vmem:[#allocation3 + $0x28] ss:$84 sps:$4 sm:$0xff]  }
  0x97   :  { %1720 = vmatprep.mubr.msk.bf16.mxu0 %vm100_vm4, %v66_v22  ;;  %v1847_v22 = vld [vmem:[#allocation3 + $0x3c] ss:$84 sps:$4 sm:$0xff]  }
  0x98   :  { %1721 = vmatmul.mubr.msk.bf16.vlgmr.msra.gmra.mxu0 %vm100_vm4, %v67_v21 }
  0x99   :  { %1725 = vmatpush3.bf16.msra.mxu0 %v1810_v25 }
  0x9a   :  { %1726 = vmatprep.subr.bf16.mxu0 %v1814_v28 }
  0x9d   :  { %1727 = vmatpush3.bf16.msra.mxu0 %v1814_v28 }
  0x9e   :  { %1732 = vmatprep.subr.bf16.mxu0 %v1818_v30 }
 0x158   :  { %v1956_v31 = vpop.f32.mrf.mxu0 }
 0x159   :  { %v309_v40 = vrot.slane %v1956_v31, 1  ;;  %v482_v59 = vrot.slane %v1956_v31, 2  ;;  %v755_v14 = vrot.slane %v1956_v31, 4  ;;  %v653_v25 = vrot.slane %v1956_v31, 3 }
 0x15a   :  { %v1958_v32 = vpop.f32.mrf.mxu0 }
 0x15b   :  { %v307_v38 = vrot.slane %v1958_v32, 1  ;;  %v480_v58 = vrot.slane %v1958_v32, 2  ;;  %v753_v13 = vrot.slane %v1958_v32, 4  ;;  %v651_v24 = vrot.slane %v1958_v32, 3 }
 0x15c   :  { %v1962_v34 = vpop.f32.mrf.mxu0 }
 0x15d   :  { %v157_v41 = vpack.c.bf16 %v1962_v34, %v1956_v31  ;;  %v310_v43 = vrot.slane %v1962_v34, 1  ;;  %v1130_v63 = vpack.c.bf16 %v1958_v32, %v1962_v34  ;;  %v483_v4 = vrot.slane %v1962_v34, 2 }
 0x15e   :  { %v1964_v35 = vpop.f32.mrf.mxu0  ;;  %v756_v21 = vrot.slane %v1962_v34, 4 }
 0x15f   :  { %v156_v37 = vpack.c.bf16 %v1964_v35, %v1958_v32  ;;  %v308_v39 = vrot.slane %v1964_v35, 1  ;;  %v1992_v51 = vsel %vm313_vm6, %v309_v40, %v310_v43  ;;  %v1996_v52 = vsel %vm313_vm6, %v310_v43, %v307_v38 }
 0x160   :  { %v319_v54 = vpack.c.bf16 %v1996_v52, %v1992_v51  ;;  %v481_v56 = vrot.slane %v1964_v35, 2  ;;  %v2027_v8 = vsel %vm484_vm7, %v482_v59, %v483_v4  ;;  %v2031_v9 = vsel %vm484_vm7, %v483_v4, %v480_v58 }
 0x161   :  { %1603 = vmatmul.mubr.msk.bf16.vlgmr.msra.gmra.mxu1 %vm198_vm5, %v156_v37  ;;  %1728 = vmatprep.mubr.msk.bf16.mxu0 %vm198_vm5, %v156_v37  ;;  %v1979_v44 = vsel %vm313_vm6, %v308_v39, %v309_v40  ;;  %v1983_v45 = vsel %vm313_vm6, %v307_v38, %v308_v39  ;;  %v490_v11 = vpack.c.bf16 %v2031_v9, %v2027_v8  ;;  %v754_v12 = vrot.slane %v1964_v35, 4  ;;  %v1851_v39 = vld [vmem:[#allocation3 + $0xe8] ss:$84 sps:$4 sm:$0xff]  }
 0x162   :  { %379 = vmatpush1.bf16.msra.mxu1 %v1815_v36  ;;  %1729 = vmatmul.mubr.msk.bf16.vlgmr.msra.gmra.mxu0 %vm198_vm5, %v157_v41  ;;  %v318_v47 = vpack.c.bf16 %v1979_v44, %v1983_v45  ;;  %v2010_v61 = vsel %vm484_vm7, %v481_v56, %v482_v59  ;;  %v2014_v62 = vsel %vm484_vm7, %v480_v58, %v481_v56  ;;  %v652_v20 = vrot.slane %v1964_v35, 3  ;;  %v1843_v40 = vld [vmem:[#allocation3 + $0xdc] ss:$84 sps:$4 sm:$0xff]  }
 0x163   :  { %1733 = vmatpush3.bf16.msra.mxu0 %v1818_v30  ;;  %247 = vmatprep.mubr.bf16.mxu1 %v1886_v1  ;;  %v489_v2 = vpack.c.bf16 %v2010_v61, %v2014_v62  ;;  %v759_v15 = vsel %vm757_vm8, %v754_v12, %v755_v14  ;;  %v760_v16 = vsel %vm757_vm8, %v753_v13, %v754_v12  ;;  %v958_v26 = vrot.slane %v1964_v35, 6 }
 0x164   :  { %1736 = vmatprep.mubr.msk.bf16.mxu0 %vm198_vm5, %v318_v47  ;;  %1734 = vmatprep.subr.bf16.mxu0 %v1819_v42  ;;  %v762_v19 = vpack.c.bf16 %v759_v15, %v760_v16  ;;  %v2058_v28 = vsel %vm655_vm9, %v652_v20, %v653_v25  ;;  %v2062_v29 = vsel %vm655_vm9, %v651_v24, %v652_v20  ;;  %v957_v30 = vrot.slane %v1958_v32, 6  ;;  %v1854_v16 = vld [vmem:[#allocation3 + $0xf0] ss:$84 sps:$4 sm:$0xff]  }
 0x165   :  { %380 = vmatprep.subr.bf16.mxu1 %v1822_v46  ;;  %v959_v36 = vrot.slane %v1956_v31, 6  ;;  %v758_v37 = vsel %vm757_vm8, %v755_v14, %v756_v21  ;;  %v761_v38 = vsel %vm757_vm8, %v756_v21, %v753_v13  ;;  %v660_v43 = vpack.c.bf16 %v2058_v28, %v2062_v29  ;;  %v1855_v21 = vld [vmem:[#allocation3 + $0x48] ss:$84 sps:$4 sm:$0xff]  }
 0x166   :  { %381 = vmatpush1.bf16.msra.mxu1 %v1820_v48  ;;  %v763_v46 = vpack.c.bf16 %v761_v38, %v758_v37  ;;  %v654_v48 = vrot.slane %v1962_v34, 3  ;;  %v1043_v58 = vrot.slane %v1958_v32, 7  ;;  %v1045_v59 = vrot.slane %v1956_v31, 7 }
 0x167   :  { %1735 = vmatpush3.bf16.msra.mxu0 %v1819_v42  ;;  %1740 = vmatprep.subr.bf16.mxu1 %v1829_v49  ;;  %v964_v42 = vsel %vm961_vm10, %v957_v30, %v958_v26  ;;  %v855_v12 = vrot.slane %v1958_v32, 5  ;;  %v857_v13 = vrot.slane %v1956_v31, 5 }
 0x168   :  { %549 = vmatprep.subr.bf16.mxu0 %v1825_v50  ;;  %v2087_v56 = vsel %vm655_vm9, %v653_v25, %v654_v48  ;;  %v1859_v25 = vld [vmem:[#allocation3 + $0xf4] ss:$84 sps:$4 sm:$0xff]  }
 0x169   :  { %1604 = vmatmul.mubr.msk.bf16.gmra.mxu1 %vm198_vm5, %v157_v41  ;;  %v963_v41 = vsel %vm961_vm10, %v958_v26, %v959_v36  ;;  %v1360_v37 = vpack.c.bf16 %v2087_v56, %v2058_v28 }
 0x16a   :  { %1737 = vmatmul.mubr.msk.bf16.vlgmr.msra.gmra.mxu0 %vm198_vm5, %v319_v54  ;;  %398 = vmatprep.mubr.bf16.mxu1 %v1886_v1  ;;  %v966_v50 = vpack.c.bf16 %v963_v41, %v964_v42 }
 0x16b   :  { %550 = vmatpush1.bf16.msra.mxu0 %v1823_v53  ;;  %569 = vmatprep.mubr.bf16.mxu0 %v1886_v1  ;;  %v1848_v53 = vld [vmem:[#allocation3 + $0x34] ss:$84 sps:$4 sm:$0xff]  }
 0x16c   :  { %551 = vmatprep.subr.bf16.mxu0 %v1828_v55  ;;  %v1853_v55 = vld [vmem:[#allocation3 + $0xec] ss:$84 sps:$4 sm:$0xff]  }
 0x16f   :  { %552 = vmatpush1.bf16.msra.mxu0 %v1826_v57  ;;  %v2091_v57 = vsel %vm655_vm9, %v654_v48, %v651_v24  ;;  %v1856_v24 = vld [vmem:[#allocation3 + $0x44] ss:$84 sps:$4 sm:$0xff]  }
 0x170   :  { %806 = vmatprep.subr.bf16.mxu0 %v1833_v60  ;;  %v661_v4 = vpack.c.bf16 %v2091_v57, %v2087_v56 }
 0x171   :  { %1613 = vmatmul.mubr.msk.bf16.vlgmr.msra.gmra.mxu1 %vm198_vm5, %v318_v47  ;;  %v1850_v47 = vld [vmem:[#allocation3 + $0x38] ss:$84 sps:$4 sm:$0xff]  }
 0x172   :  { %1741 = vmatpush3.bf16.msra.mxu1 %v1829_v49  ;;  %1623 = vmatmul.mubr.msk.bf16.vlgmr.msra.gmra.mxu0 %vm198_vm5, %v489_v2  ;;  %v960_v49 = vrot.slane %v1962_v34, 6 }
 0x173   :  { %408 = vmatprep.mubr.bf16.mxu1 %v1886_v1  ;;  %1742 = vmatprep.subr.bf16.mxu1 %v1830_v0 }
 0x174   :  { %579 = vmatprep.mubr.bf16.mxu0 %v1886_v1  ;;  %807 = vmatpush1.bf16.msra.mxu0 %v1831_v3  ;;  %v962_v60 = vsel %vm961_vm10, %v959_v36, %v960_v49  ;;  %v1129_v36 = vpack.c.bf16 %v1956_v31, %v1964_v35  ;;  %v1283_v31 = vpack.c.bf16 %v2027_v8, %v2010_v61 }
 0x175   :  { %808 = vmatprep.subr.bf16.mxu0 %v1836_v5 }
 0x176   :  { %1743 = vmatpush3.bf16.msra.mxu1 %v1830_v0  ;;  %v965_v0 = vsel %vm961_vm10, %v960_v49, %v957_v30  ;;  %v1857_v30 = vld [vmem:[#allocation3 + $0xf8] ss:$84 sps:$4 sm:$0xff]  }
 0x177   :  { %704 = vmatprep.subr.bf16.mxu1 %v1839_v6  ;;  %v967_v5 = vpack.c.bf16 %v965_v0, %v962_v60  ;;  %v1852_v6 = vld [vmem:[#allocation3 + $0x40] ss:$84 sps:$4 sm:$0xff]  }
 0x178   :  { %809 = vmatpush1.bf16.msra.mxu0 %v1834_v7  ;;  %v856_v7 = vrot.slane %v1964_v35, 5 }
 0x179   :  { %1614 = vmatmul.mubr.msk.bf16.gmra.mxu1 %vm198_vm5, %v319_v54  ;;  %1748 = vmatprep.subr.bf16.mxu0 %v1846_v10  ;;  %v1044_v54 = vrot.slane %v1964_v35, 7  ;;  %v1361_v35 = vpack.c.bf16 %v2062_v29, %v2091_v57 }
 0x17a   :  { %1624 = vmatmul.mubr.msk.bf16.gmra.mxu0 %vm198_vm5, %v490_v11  ;;  %1744 = vmatprep.mubr.msk.bf16.mxu1 %vm198_vm5, %v489_v2  ;;  %v861_v14 = vsel %vm859_vm12, %v856_v7, %v857_v13  ;;  %v862_v15 = vsel %vm859_vm12, %v855_v12, %v856_v7 }
 0x17b   :  { %826 = vmatprep.mubr.bf16.mxu0 %v1886_v1  ;;  %v1049_v2 = vsel %vm1047_vm11, %v1044_v54, %v1045_v59  ;;  %v1050_v3 = vsel %vm1047_vm11, %v1043_v58, %v1044_v54 }
 0x181   :  { %1745 = vmatmul.mubr.msk.bf16.vlgmr.msra.gmra.mxu1 %vm198_vm5, %v490_v11  ;;  %v1046_v11 = vrot.slane %v1962_v34, 7 }
 0x182   :  { %705 = vmatpush1.bf16.msra.mxu1 %v1837_v17  ;;  %1637 = vmatmul.mubr.msk.bf16.vlgmr.msra.gmra.mxu0 %vm198_vm5, %v762_v19  ;;  %v864_v19 = vpack.c.bf16 %v861_v14, %v862_v15 }
 0x183   :  { %706 = vmatprep.subr.bf16.mxu1 %v1842_v18  ;;  %724 = vmatprep.mubr.bf16.mxu1 %v1886_v1  ;;  %v1048_v17 = vsel %vm1047_vm11, %v1045_v59, %v1046_v11  ;;  %v1051_v18 = vsel %vm1047_vm11, %v1046_v11, %v1043_v58 }
 0x184   :  { %836 = vmatprep.mubr.bf16.mxu0 %v1886_v1  ;;  %1749 = vmatpush3.bf16.msra.mxu0 %v1846_v10  ;;  %v1052_v10 = vpack.c.bf16 %v1049_v2, %v1050_v3  ;;  %v1053_v20 = vpack.c.bf16 %v1051_v18, %v1048_v17 }
 0x185   :  { %1750 = vmatprep.subr.bf16.mxu0 %v1847_v22 }
 0x186   :  { %707 = vmatpush1.bf16.msra.mxu1 %v1840_v23  ;;  %v1206_v23 = vpack.c.bf16 %v1992_v51, %v1979_v44  ;;  %v1207_v51 = vpack.c.bf16 %v1983_v45, %v1996_v52  ;;  %v1860_v45 = vld [vmem:[#allocation3 + $0x4c] ss:$84 sps:$4 sm:$0xff]   ;;  %v1284_v52 = vpack.c.bf16 %v2014_v62, %v2031_v9 }
 0x187   :  { %908 = vmatprep.subr.bf16.mxu1 %v1845_v27 }
 0x188   :  { %1751 = vmatpush3.bf16.msra.mxu0 %v1847_v22  ;;  %v858_v22 = vrot.slane %v1962_v34, 5 }
 0x189   :  { %1631 = vmatmul.mubr.msk.bf16.vlgmr.msra.gmra.mxu1 %vm198_vm5, %v660_v43  ;;  %1756 = vmatprep.subr.bf16.mxu0 %v1851_v39 }
 0x18a   :  { %909 = vmatpush1.bf16.msra.mxu1 %v1843_v40  ;;  %1638 = vmatmul.mubr.msk.bf16.gmra.mxu0 %vm198_vm5, %v763_v46  ;;  %v860_v26 = vsel %vm859_vm12, %v857_v13, %v858_v22  ;;  %v863_v27 = vsel %vm859_vm12, %v858_v22, %v855_v12 }
 0x18b   :  { %1752 = vmatprep.mubr.msk.bf16.mxu0 %vm198_vm5, %v966_v50  ;;  %734 = vmatprep.mubr.bf16.mxu1 %v1886_v1  ;;  %v865_v44 = vpack.c.bf16 %v863_v27, %v860_v26 }
 0x18c   :  { %910 = vmatprep.subr.bf16.mxu1 %v1850_v47 }
 0x18e   :  { %911 = vmatpush1.bf16.msra.mxu1 %v1848_v53  ;;  %v2174_v53 = vadd.s32 8, %v1960_v33 }
 0x18f   :  { %1764 = vmatprep.subr.bf16.mxu1 %v1853_v55 }
 0x190   :  { %vm1439_vm13 = vcmp.lt.s32.totalorder %v2174_v53, 14  ;;  %vm1463_vm15 = vcmp.lt.s32.totalorder %v2174_v53, 11 }
 0x191   :  { %1632 = vmatmul.mubr.msk.bf16.gmra.mxu1 %vm198_vm5, %v661_v4 }
 0x192   :  { %1753 = vmatmul.mubr.msk.bf16.vlgmr.msra.gmra.mxu0 %vm198_vm5, %v967_v5  ;;  %928 = vmatprep.mubr.bf16.mxu1 %v1886_v1 }
 0x193   :  { %1757 = vmatpush3.bf16.msra.mxu0 %v1851_v39  ;;  %1760 = vmatprep.mubr.msk.bf16.mxu0 %vm198_vm5, %v1052_v10 }
 0x194   :  { %1758 = vmatprep.subr.bf16.mxu0 %v1852_v6 }
 0x197   :  { %1759 = vmatpush3.bf16.msra.mxu0 %v1852_v6 }
 0x198   :  { %1772 = vmatprep.subr.bf16.mxu0 %v1854_v16 }
 0x199   :  { %1643 = vmatmul.mubr.msk.bf16.vlgmr.msra.gmra.mxu1 %vm198_vm5, %v864_v19 }
 0x19a   :  { %1765 = vmatpush3.bf16.msra.mxu1 %v1853_v55  ;;  %1761 = vmatmul.mubr.msk.bf16.vlgmr.msra.gmra.mxu0 %vm198_vm5, %v1053_v20 }
 0x19b   :  { %1773 = vmatpush3.bf16.msra.mxu0 %v1854_v16  ;;  %1776 = vmatprep.mubr.msk.bf16.mxu0 %vm198_vm5, %v1206_v23 }
 0x19c   :  { %1774 = vmatprep.subr.bf16.mxu0 %v1855_v21  ;;  %938 = vmatprep.mubr.bf16.mxu1 %v1886_v1  ;;  %v1858_v1 = vld [vmem:[#allocation3 + $0x50] ss:$84 sps:$4 sm:$0xff]  }
 0x19d   :  { %1766 = vmatprep.subr.bf16.mxu1 %v1856_v24 }
 0x19e   :  { %1767 = vmatpush3.bf16.msra.mxu1 %v1856_v24 }
 0x19f   :  { %1775 = vmatpush3.bf16.msra.mxu0 %v1855_v21  ;;  %1780 = vmatprep.subr.bf16.mxu1 %v1859_v25 }
 0x1a0   :  { %1788 = vmatprep.subr.bf16.mxu0 %v1857_v30 }
 0x1a1   :  { %1644 = vmatmul.mubr.msk.bf16.gmra.mxu1 %vm198_vm5, %v865_v44 }
 0x1a2   :  { %1768 = vmatprep.mubr.msk.bf16.mxu1 %vm198_vm5, %v1129_v36  ;;  %1777 = vmatmul.mubr.msk.bf16.vlgmr.msra.gmra.mxu0 %vm198_vm5, %v1207_v51 }
 0x1a3   :  { %1789 = vmatpush3.bf16.msra.mxu0 %v1857_v30  ;;  %1792 = vmatprep.mubr.msk.bf16.mxu0 %vm198_vm5, %v1360_v37 }
 0x1a4   :  { %1790 = vmatprep.subr.bf16.mxu0 %v1858_v1 }
 0x1a7   :  { %1791 = vmatpush3.bf16.msra.mxu0 %v1858_v1 }
 0x1a9   :  { %1769 = vmatmul.mubr.msk.bf16.vlgmr.msra.gmra.mxu1 %vm198_vm5, %v1130_v63 }
 0x1aa   :  { %1781 = vmatpush3.bf16.msra.mxu1 %v1859_v25  ;;  %1784 = vmatprep.mubr.msk.bf16.mxu1 %vm198_vm5, %v1283_v31 }
 0x1ab   :  { %1793 = vmatmul.mubr.msk.bf16.vlgmr.msra.gmra.mxu0 %vm198_vm5, %v1361_v35  ;;  %1782 = vmatprep.subr.bf16.mxu1 %v1860_v45 }
 0x1ae   :  { %1783 = vmatpush3.bf16.msra.mxu1 %v1860_v45 }
 0x1b1   :  { %1785 = vmatmul.mubr.msk.bf16.vlgmr.msra.gmra.mxu1 %vm198_vm5, %v1284_v52 }
 0x221   :  { %v239_v61 = vpop.f32.mrf.mxu1 }
 0x222   :  { %v2157_v8 = vpop.f32.mrf.mxu0 }
 0x223   :  { %v2159_v28 = vpop.f32.mrf.mxu1 }
 0x224   :  { %v2161_v32 = vpop.f32.mrf.mxu0 }
 0x225   :  { %v243_v34 = vpop.f32.mrf.mxu1 }
 0x226   :  { %v1731_v63 = vpop.f32.mrf.mxu0 }
 0x227   :  { %v2163_v29 = vpop.f32.mrf.mxu1 }
 0x228   :  { %v295_v38 = vpop.f32.mrf.mxu0 }
 0x229   :  { %v249_v39 = vpop.f32.mrf.mxu1 }
 0x22a   :  { %v2165_v40 = vpop.f32.mrf.mxu0 }
 0x22b   :  { %v2167_v41 = vpop.f32.mrf.mxu1 }
 0x22c   :  { %v2169_v62 = vpop.f32.mrf.mxu0 }
 0x22d   :  { %v253_v9 = vpop.f32.mrf.mxu1 }
 0x22e   :  { %v1739_v42 = vpop.f32.mrf.mxu0 }
 0x22f   :  { %v2171_v43 = vpop.f32.mrf.mxu1 }
 0x230   :  { %v456_v46 = vpop.f32.mrf.mxu0 }
 0x231   :  { %v400_v47 = vpop.f32.mrf.mxu1 }
 0x232   :  { %v468_v48 = vadd.f32 %v400_v47, %v239_v61  ;;  %v571_v49 = vpop.f32.mrf.mxu0 }
 0x233   :  { %v402_v50 = vpop.f32.mrf.mxu1 }
 0x234   :  { %v639_v54 = vadd.f32 %v571_v49, %v468_v48  ;;  %v2176_v55 = vpop.f32.mrf.mxu0 }
 0x235   :  { %v404_v56 = vpop.f32.mrf.mxu1 }
 0x236   :  { %v469_v57 = vadd.f32 %v404_v56, %v243_v34  ;;  %v575_v58 = vpop.f32.mrf.mxu0 }
 0x237   :  { %v406_v59 = vpop.f32.mrf.mxu1 }
 0x238   :  { %v640_v60 = vadd.f32 %v575_v58, %v469_v57  ;;  %v577_v0 = vpop.f32.mrf.mxu0  ;;  %v473_v56 = vadd.f32 %v406_v59, %v2163_v29  ;;  %v472_v58 = vadd.f32 %v402_v50, %v2159_v28  ;;  %v476_v29 = vadd.f32 %v2169_v62, %v2161_v32 }
 0x239   :  { %v410_v2 = vpop.f32.mrf.mxu1 }
 0x23a   :  { %v1445_v3 = vsel %vm1439_vm13, %v640_v60, -inf  ;;  %v581_v4 = vpop.f32.mrf.mxu0  ;;  %v470_v11 = vadd.f32 %v410_v2, %v249_v39 }
 0x23b   :  { %v1448_v5 = vmax.f32 %v639_v54, %v1445_v3  ;;  %v412_v6 = vpop.f32.mrf.mxu1 }
 0x23c   :  { %v2181_v7 = vpop.f32.mrf.mxu0  ;;  %v641_v19 = vadd.f32 %v581_v4, %v470_v11  ;;  %v644_v4 = vadd.f32 %v577_v0, %v473_v56  ;;  %v474_v59 = vadd.f32 %v412_v6, %v2167_v41 }
 0x23d   :  { %v1449_v10 = vrot.slane %v1448_v5, 4  ;;  %v414_v12 = vpop.f32.mrf.mxu1 }
 0x23e   :  { %v471_v13 = vadd.f32 %v414_v12, %v253_v9  ;;  %v585_v14 = vpop.f32.mrf.mxu0  ;;  %v645_v32 = vadd.f32 %v2181_v7, %v474_v59 }
 0x23f   :  { %v1450_v15 = vmax.f32 %v1448_v5, %v1449_v10  ;;  %v416_v16 = vpop.f32.mrf.mxu1  ;;  %v643_v10 = vadd.f32 %v2176_v55, %v472_v58 }
 0x240   :  { %v642_v17 = vadd.f32 %v585_v14, %v471_v13  ;;  %v587_v18 = vpop.f32.mrf.mxu0  ;;  %v475_v28 = vadd.f32 %v416_v16, %v2171_v43 }
 0x241   :  { %v1746_v20 = vpop.f32.mrf.mxu1  ;;  %v1451_v23 = vrot.slane %v1450_v15, 2 }
 0x242   :  { %v1447_v21 = vsel %vm1439_vm13, %v642_v17, -inf  ;;  %v828_v22 = vpop.f32.mrf.mxu0  ;;  %v478_v17 = vadd.f32 %v2165_v40, %v2157_v8 }
 0x243   :  { %v1455_v24 = vmax.f32 %v641_v19, %v1447_v21  ;;  %v624_v25 = vpop.f32.mrf.mxu1  ;;  %v1452_v51 = vmax.f32 %v1450_v15, %v1451_v23 }
 0x244   :  { %v2185_v26 = vpop.f32.mrf.mxu0  ;;  %v649_v19 = vadd.f32 %v1746_v20, %v478_v17  ;;  %v647_v21 = vadd.f32 %v624_v25, %v476_v29 }
 0x245   :  { %v1456_v27 = vrot.slane %v1455_v24, 4  ;;  %v1747_v30 = vpop.f32.mrf.mxu1  ;;  %v1453_v52 = vrot.slane %v1452_v51, 1 }
 0x246   :  { %v832_v44 = vpop.f32.mrf.mxu0  ;;  %v646_v30 = vadd.f32 %v587_v18, %v475_v28 }
 0x247   :  { %v1457_v36 = vmax.f32 %v1455_v24, %v1456_v27  ;;  %v627_v1 = vpop.f32.mrf.mxu1  ;;  %v1454_v42 = vmax.f32 %v1452_v51, %v1453_v52 }
 0x248   :  { %v834_v37 = vpop.f32.mrf.mxu0 }
 0x249   :  { %v1458_v45 = vrot.slane %v1457_v36, 2  ;;  %v726_v31 = vpop.f32.mrf.mxu1 }
 0x24a   :  { %v2187_v35 = vpop.f32.mrf.mxu0  ;;  %v745_v14 = vadd.f32 %v726_v31, %v643_v10 }
 0x24b   :  { %v1459_v61 = vmax.f32 %v1457_v36, %v1458_v45  ;;  %v728_v34 = vpop.f32.mrf.mxu1 }
 0x24c   :  { %v840_v63 = vpop.f32.mrf.mxu0  ;;  %v847_v24 = vadd.f32 %v828_v22, %v745_v14  ;;  %v749_v51 = vadd.f32 %v728_v34, %v647_v21 }
 0x24d   :  { %v1460_v38 = vrot.slane %v1459_v61, 1  ;;  %v730_v39 = vpop.f32.mrf.mxu1 }
 0x24e   :  { %v842_v9 = vpop.f32.mrf.mxu0  ;;  %v746_v12 = vadd.f32 %v730_v39, %v644_v4 }
 0x24f   :  { %v1461_v46 = vmax.f32 %v1459_v61, %v1460_v38  ;;  %v732_v47 = vpop.f32.mrf.mxu1 }
 0x250   :  { %v844_v48 = vpop.f32.mrf.mxu0  ;;  %v848_v23 = vadd.f32 %v832_v44, %v746_v12  ;;  %v851_v44 = vadd.f32 %v2185_v26, %v749_v51 }
 0x251   :  { %v736_v49 = vpop.f32.mrf.mxu1  ;;  %v2190_v54 = vsel %vm1511_vm14, %v1461_v46, %v1454_v42 }
 0x252   :  { %v1754_v57 = vpop.f32.mrf.mxu0  ;;  %v747_v20 = vadd.f32 %v736_v49, %v645_v32 }
 0x253   :  { %v738_v60 = vpop.f32.mrf.mxu1 }
 0x254   :  { %v1024_v2 = vpop.f32.mrf.mxu0  ;;  %v751_v8 = vadd.f32 %v738_v60, %v649_v19  ;;  %v849_v38 = vadd.f32 %v2187_v35, %v747_v20  ;;  %v1526_v60 = vsub.s32 0, %v1960_v33  ;;  %v1522_v35 = vld [vmem:[%s2234_s3] sm:$0x7] }
 0x255   :  { %v740_v3 = vpop.f32.mrf.mxu1 }
 0x256   :  { %v1755_v5 = vpop.f32.mrf.mxu0  ;;  %v748_v16 = vadd.f32 %v740_v3, %v646_v30  ;;  %v853_v18 = vadd.f32 %v840_v63, %v751_v8 }
 0x257   :  { %v742_v11 = vpop.f32.mrf.mxu1 }
 0x258   :  { %v1027_v13 = vpop.f32.mrf.mxu0  ;;  %v850_v7 = vadd.f32 %v842_v9, %v748_v16 }
 0x259   :  { %v930_v15 = vpop.f32.mrf.mxu1 }
 0x25a   :  { %v1762_v50 = vpop.f32.mrf.mxu0  ;;  %v949_v62 = vadd.f32 %v930_v15, %v847_v24 }
 0x25b   :  { %v932_v0 = vpop.f32.mrf.mxu1 }
 0x25c   :  { %v1110_v55 = vpop.f32.mrf.mxu0  ;;  %v953_v31 = vadd.f32 %v932_v0, %v851_v44  ;;  %v1530_v0 = vsub.s32 1, %v1960_v33 }
 0x25d   :  { %v934_v27 = vpop.f32.mrf.mxu1 }
 0x25e   :  { %v950_v40 = vadd.f32 %v934_v27, %v848_v23  ;;  %v1763_v36 = vpop.f32.mrf.mxu0  ;;  %v1039_v56 = vadd.f32 %v1024_v2, %v953_v31  ;;  %v1527_v2 = vrot.slane %v1522_v35, %v1526_v60  ;;  %v1531_v32 = vrot.slane %v1522_v35, %v1530_v0 }
 0x25f   :  { %v936_v43 = vpop.f32.mrf.mxu1 }
 0x260   :  { %v1469_v41 = vsel %vm1463_vm15, %v950_v40, -inf  ;;  %v1113_v6 = vpop.f32.mrf.mxu0  ;;  %v1125_v11 = vadd.f32 %v1110_v55, %v1039_v56  ;;  %v1539_v19 = vadd.f32 %v1527_v2, %v2190_v54 }
 0x261   :  { %v1472_v25 = vmax.f32 %v949_v62, %v1469_v41  ;;  %v940_v22 = vpop.f32.mrf.mxu1  ;;  %v1548_v6 = vld [vmem:[%s2235_s4] sm:$0x7] }
 0x262   :  { %v1778_v1 = vpop.f32.mrf.mxu0  ;;  %v951_v48 = vadd.f32 %v940_v22, %v849_v38  ;;  %v1542_v62 = vmul.f32 0.01, %v1539_v19 }
 0x263   :  { %v1473_v37 = vrot.slane %v1472_v25, 4  ;;  %v942_v45 = vpop.f32.mrf.mxu1 }
 0x264   :  { %v955_v52 = vadd.f32 %v942_v45, %v853_v18  ;;  %v1264_v61 = vpop.f32.mrf.mxu0  ;;  %v1553_v45 = vrot.slane %v1548_v6, %v1526_v60 }
 0x265   :  { %v1474_v34 = vmax.f32 %v1472_v25, %v1473_v37  ;;  %v944_v39 = vpop.f32.mrf.mxu1  ;;  %v1545_v37 = vmax.f32 %v1539_v19, %v1542_v62 }
 0x266   :  { %v1041_v42 = vadd.f32 %v1754_v57, %v955_v52  ;;  %v952_v46 = vadd.f32 %v944_v39, %v850_v7  ;;  %v1779_v47 = vpop.f32.mrf.mxu0  ;;  %v1557_v7 = vrot.slane %v1548_v6, %v1530_v0 }
 0x267   :  { %v946_v49 = vpop.f32.mrf.mxu1  ;;  %v1475_v3 = vrot.slane %v1474_v34, 2 }
 0x268   :  { %v1471_v26 = vsel %vm1463_vm15, %v952_v46, -inf  ;;  %v1267_v63 = vpop.f32.mrf.mxu0  ;;  %v1127_v58 = vadd.f32 %v1762_v50, %v1041_v42  ;;  %v1565_v42 = vmul.f32 %v1553_v45, %v1545_v37 }
 0x269   :  { %v1479_v4 = vmax.f32 %v951_v48, %v1471_v26  ;;  %v1770_v9 = vpop.f32.mrf.mxu1  ;;  %v1476_v13 = vmax.f32 %v1474_v34, %v1475_v3  ;;  %v1534_v48 = vsub.s32 2, %v1960_v33 }
 0x26a   :  { %v1204_v12 = vadd.f32 %v1770_v9, %v1127_v58  ;;  %v1569_v63 = vsel %vm1568_vm0, %v1565_v42, 0.0 }
 0x26b   :  { %v1480_v57 = vrot.slane %v1479_v4, 4  ;;  %v1794_v5 = vpop.f32.mrf.mxu0  ;;  %v1187_v10 = vpop.f32.mrf.mxu1  ;;  %v1477_v21 = vrot.slane %v1476_v13, 1 }
 0x26c   :  { %v1202_v17 = vadd.f32 %v1187_v10, %v1125_v11  ;;  %v1281_v59 = vadd.f32 %v1778_v1, %v1204_v12  ;;  %v1561_v12 = vrot.slane %v1548_v6, %v1534_v48 }
 0x26d   :  { %v1481_v53 = vmax.f32 %v1479_v4, %v1480_v57  ;;  %v1418_v14 = vpop.f32.mrf.mxu0  ;;  %v1771_v15 = vpop.f32.mrf.mxu1  ;;  %v1478_v43 = vmax.f32 %v1476_v13, %v1477_v21  ;;  %v1535_v4 = vrot.slane %v1522_v35, %v1534_v48 }
 0x26e   :  { %v1279_v30 = vadd.f32 %v1264_v61, %v1202_v17 }
 0x26f   :  { %v1482_v29 = vrot.slane %v1481_v53, 2  ;;  %v1795_v28 = vpop.f32.mrf.mxu0  ;;  %v1190_v50 = vpop.f32.mrf.mxu1 }
 0x271   :  { %v1483_v23 = vmax.f32 %v1481_v53, %v1482_v29  ;;  %v1421_v24 = vpop.f32.mrf.mxu0  ;;  %v1786_v27 = vpop.f32.mrf.mxu1 }
 0x272   :  { %v1358_v55 = vadd.f32 %v1786_v27, %v1281_v59 }
 0x273   :  { %v1484_v51 = vrot.slane %v1483_v23, 1  ;;  %v1341_v8 = vpop.f32.mrf.mxu1 }
 0x274   :  { %v1435_v40 = vadd.f32 %v1794_v5, %v1358_v55  ;;  %v1356_v36 = vadd.f32 %v1341_v8, %v1279_v30 }
 0x275   :  { %v1485_v16 = vmax.f32 %v1483_v23, %v1484_v51  ;;  %v1787_v41 = vpop.f32.mrf.mxu1 }
 0x276   :  { %v1493_v54 = vsel %vm655_vm9, %v1435_v40, -inf  ;;  %v1433_v20 = vadd.f32 %v1418_v14, %v1356_v36  ;;  %v1669_v14 = vld [vmem:[#allocation2] ss:$0 sm:$0xff] }
 0x277   :  { %v1503_v25 = vrot.slane %v1493_v54, 4  ;;  %v1344_v22 = vpop.f32.mrf.mxu1  ;;  %v1516_v44 = vsel %vm1511_vm14, %v1485_v16, %v1478_v43 }
 0x278   :  { %v1491_v1 = vsel %vm655_vm9, %v1433_v20, -inf  ;;  %v1540_v18 = vadd.f32 %v1531_v32, %v1516_v44 }
 0x279   :  { %v1504_v31 = vmax.f32 %v1493_v54, %v1503_v25  ;;  %v1496_v52 = vrot.slane %v1491_v1, 4 }
 0x27a   :  { %v1543_v61 = vmul.f32 0.01, %v1540_v18 }
 0x27b   :  { %v1505_v34 = vrot.slane %v1504_v31, 2  ;;  %v1497_v38 = vmax.f32 %v1491_v1, %v1496_v52 }
 0x27c   :  { %v1546_v39 = vmax.f32 %v1540_v18, %v1543_v61 }
 0x27d   :  { %v1506_v46 = vmax.f32 %v1504_v31, %v1505_v34  ;;  %v1498_v47 = vrot.slane %v1497_v38, 2 }
 0x27e   :  { %v1566_v49 = vmul.f32 %v1557_v7, %v1546_v39 }
 0x27f   :  { %v1507_v56 = vrot.slane %v1506_v46, 1  ;;  %v1499_v26 = vmax.f32 %v1497_v38, %v1498_v47 }
 0x280   :  { %v1570_v58 = vsel %vm1568_vm0, %v1566_v49, 0.0 }
 0x281   :  { %v1500_v60 = vrot.slane %v1499_v26, 1  ;;  %v1571_v3 = vadd.f32 %v1570_v58, %v1569_v63  ;;  %v1508_v9 = vmax.f32 %v1506_v46, %v1507_v56 }
 0x283   :  { %v1501_v57 = vmax.f32 %v1499_v26, %v1500_v60 }
 0x285   :  { %v1520_v5 = vsel %vm1511_vm14, %v1508_v9, %v1501_v57 }
 0x286   :  { %v1541_v10 = vadd.f32 %v1535_v4, %v1520_v5 }
 0x288   :  { %v1544_v11 = vmul.f32 0.01, %v1541_v10 }
 0x28a   :  { %v1547_v2 = vmax.f32 %v1541_v10, %v1544_v11 }
 0x28c   :  { %v1567_v13 = vmul.f32 %v1561_v12, %v1547_v2 }
 0x28e   :  { %v1572_v33 = vsel %vm1568_vm0, %v1567_v13, 0.0 }
 0x28f   :  { %v1573_v53 = vadd.f32 %v1572_v33, %v1571_v3 }
 0x291   :  { %1574 = vadd.xlane.f32.xlu0 %v1573_v53 }
 0x31a   :  { %v1575_v15 = vpop.xlane.xlu0 %1574 }
 0x31b   :  { %v1583_v17 = vadd.f32 %v1669_v14, %v1575_v15 }
 0x31d   :  { %1585 = vst.msk [vmem:[%s2237_s6] sm:$0x3] %vm1584_vm1, %v1583_v17 }
 0x31e   :  { %1590 = vsyncpa [#allocation4], 1 }

</bundles_post_ra>
